<compile_context>
chip_gen: v7x
topology: tpu7x:2x2x1
jax: 0.10.0
libtpu: 0.0.40
codegen_flags: <defaults>
</compile_context>

<pallas_src>
import numpy as np
import jax
import jax.numpy as jnp
from jax.experimental import pallas as pl
from jax.experimental.pallas import tpu as pltpu


# ----------------------------------------------------------------------------
# Init-time kernel: row normalization  diag(rowsum(X)**0.5) @ X  (inf -> 0)
# ----------------------------------------------------------------------------
def _row_normalize_kernel(x_ref, o_ref):
    x = x_ref[...]
    r = jnp.sqrt(jnp.sum(x, axis=-1, keepdims=True))
    r = jnp.where(jnp.isinf(r), 0.0, r)
    o_ref[...] = r * x


def row_normalize(x):
    """Per-graph row normalization for a batched (B, N, M) array (init-time)."""
    b, n, m = x.shape
    return pl.pallas_call(
        _row_normalize_kernel,
        out_shape=jax.ShapeDtypeStruct((b, n, m), jnp.float32),
        grid=(b,),
        in_specs=[pl.BlockSpec((pl.Squeezed(), n, m), lambda i: (i, 0, 0))],
        out_specs=pl.BlockSpec((pl.Squeezed(), n, m), lambda i: (i, 0, 0)),
        compiler_params=pltpu.CompilerParams(
            dimension_semantics=("parallel",)),
    )(x)


# ----------------------------------------------------------------------------
# Forward kernel: two fused AFW + ReLU hops.  Body sees one graph's 2D tiles;
# the hop-0 intermediate never leaves VMEM/vregs.
# ----------------------------------------------------------------------------
def _two_hop_kernel(a_ref, f_ref, w0_ref, w1_ref, o_ref):
    a = a_ref[...]                                        # (N, N) normalized A
    f = f_ref[...]                                        # (N, D) normalized F

    # hop 0:  F1 = relu((A @ F) @ W0)
    af = jnp.dot(a, f, preferred_element_type=jnp.float32)
    f = jnp.maximum(
        jnp.dot(af, w0_ref[...], preferred_element_type=jnp.float32), 0.0)

    # hop 1:  F2 = relu((A @ F1) @ W1)
    af = jnp.dot(a, f, preferred_element_type=jnp.float32)
    f = jnp.maximum(
        jnp.dot(af, w1_ref[...], preferred_element_type=jnp.float32), 0.0)

    o_ref[...] = f


def mymodel8_forward(a_norm, f_norm, w0, w1):
    """Forward pass of mymodel8 on already-normalized A/F.

    - 3D inputs (B, N, N) / (B, N, D): one launch, batch grid axis, weights
      kept VMEM-resident across grid steps, batch axis marked "parallel".
    - 2D inputs (N, N) / (N, D): single graph, no grid, whole arrays in VMEM.
    """
    d = w0.shape[0]
    assert w0.shape == (d, d) and w1.shape == (d, d)

    if a_norm.ndim == 2:
        # Single problem: no grid / no pipeline machinery, one DMA per operand.
        n = a_norm.shape[0]
        assert a_norm.shape == (n, n) and f_norm.shape == (n, d)
        vmem_spec = pl.BlockSpec(memory_space=pltpu.MemorySpace.VMEM)
        return pl.pallas_call(
            _two_hop_kernel,
            out_shape=jax.ShapeDtypeStruct((n, d), jnp.float32),
            in_specs=[vmem_spec, vmem_spec, vmem_spec, vmem_spec],
            out_specs=vmem_spec,
        )(a_norm, f_norm, w0, w1)

    # Batched: one launch for B graphs.
    b, n, _ = a_norm.shape
    assert a_norm.shape == (b, n, n) and f_norm.shape == (b, n, d)
    return pl.pallas_call(
        _two_hop_kernel,
        out_shape=jax.ShapeDtypeStruct((b, n, d), jnp.float32),
        grid=(b,),
        in_specs=[
            pl.BlockSpec((pl.Squeezed(), n, n), lambda i: (i, 0, 0)),  # A[i]
            pl.BlockSpec((pl.Squeezed(), n, d), lambda i: (i, 0, 0)),  # F[i]
            pl.BlockSpec((d, d), lambda i: (0, 0)),   # W0: constant -> resident
            pl.BlockSpec((d, d), lambda i: (0, 0)),   # W1: constant -> resident
        ],
        out_specs=pl.BlockSpec((pl.Squeezed(), n, d), lambda i: (i, 0, 0)),
        compiler_params=pltpu.CompilerParams(
            dimension_semantics=("parallel",)),       # shards batch on v7x 2-TC
    )(a_norm, f_norm, w0, w1)


# ----------------------------------------------------------------------------
# Host-side helpers
# ----------------------------------------------------------------------------
def xavier_uniform(key, fan_in, fan_out):
    # TODO(synk): torch RNG / Parameter registration has no Pallas equivalent;
    # the per-hop xavier-uniform weights are generated host-side with jax.random.
    limit = float(np.sqrt(6.0 / (fan_in + fan_out)))
    return jax.random.uniform(key, (fan_in, fan_out), jnp.float32,
                              minval=-limit, maxval=limit)


def normalize_ref(mx):
    # Pure-JAX reference of the module's normalize (rowsum ** +0.5, inf -> 0).
    r = jnp.power(mx.sum(axis=-1), 0.5)
    r = jnp.where(jnp.isinf(r), 0.0, r)
    return r[..., None] * mx


# ----------------------------------------------------------------------------
# Main
# ----------------------------------------------------------------------------
if __name__ == "__main__":
    B, N, D = 4, 32, 128   # B independent small graphs, N nodes, D features

    key = jax.random.PRNGKey(0)
    k_a, k_f, k_w0, k_w1 = jax.random.split(key, 4)

    # Deterministic synthetic inputs (non-negative, adjacency/feature-like).
    A_raw = jax.random.uniform(k_a, (B, N, N), jnp.float32)
    F_raw = jax.random.uniform(k_f, (B, N, D), jnp.float32)

    # One xavier-uniform (D, D) weight per hop (AF.shape[1] == D), shared
    # across the batch of graphs.
    w0 = xavier_uniform(k_w0, D, D)
    w1 = xavier_uniform(k_w1, D, D)

    # "__init__": normalize A and F once (Pallas kernel, batched over graphs).
    A_n = jax.block_until_ready(row_normalize(A_raw))
    F_n = jax.block_until_ready(row_normalize(F_raw))

    # forward(): batched single-launch path.
    out_b = jax.block_until_ready(mymodel8_forward(A_n, F_n, w0, w1))

    # forward(): single-graph, no-grid path (whole arrays in VMEM).
    out_1 = jax.block_until_ready(mymodel8_forward(A_n[0], F_n[0], w0, w1))

    # Cross-check against a pure-JAX reference of the same math.
    a_ref = normalize_ref(A_raw)
    ref = normalize_ref(F_raw)
    for w in (w0, w1):
        ref = jnp.maximum(jnp.einsum("bij,bjk->bik", a_ref, ref) @ w, 0.0)

    np.testing.assert_allclose(np.asarray(out_b), np.asarray(ref),
                               rtol=1e-4, atol=1e-2)
    np.testing.assert_allclose(np.asarray(out_1), np.asarray(ref[0]),
                               rtol=1e-4, atol=1e-2)

    print("KERNEL_OK")
</pallas_src>

<mosaic_0001>
module attributes {stable_mosaic.version = 11 : i64} {
  func.func @_row_normalize_kernel(%arg0: i32, %arg1: memref<1x32x32xf32, #tpu.memory_space<vmem>>, %arg2: memref<1x32x32xf32, #tpu.memory_space<vmem>>) attributes {dimension_semantics = [#tpu.dimension_semantics<parallel>], iteration_bounds = array<i64: 4>, scalar_prefetch = 0 : i64, scratch_operands = 0 : i64, tpu.core_type = #tpu.core_type<tc>, window_params = [{transform_indices = @transform_0, window_bounds = array<i64: 1, 32, 32>}, {transform_indices = @transform_1, window_bounds = array<i64: 1, 32, 32>}]} {
    %c0 = arith.constant 0 : index
    %c0_0 = arith.constant 0 : index
    %c0_1 = arith.constant 0 : index
    %0 = vector.load %arg1[%c0, %c0_0, %c0_1] : memref<1x32x32xf32, #tpu.memory_space<vmem>>, vector<1x32x32xf32>
    %1 = vector.shape_cast %0 : vector<1x32x32xf32> to vector<32x32xf32>
    %cst = arith.constant dense<0.000000e+00> : vector<32xf32>
    %2 = vector.multi_reduction <add>, %1, %cst [1] : vector<32x32xf32> to vector<32xf32>
    %3 = vector.shape_cast %2 : vector<32xf32> to vector<32x1xf32>
    %4 = math.sqrt %3 : vector<32x1xf32>
    %5 = math.absf %4 : vector<32x1xf32>
    %cst_2 = arith.constant 0x7F800000 : f32
    %6 = vector.broadcast %cst_2 : f32 to vector<32x1xf32>
    %7 = arith.cmpf oeq, %5, %6 : vector<32x1xf32>
    %cst_3 = arith.constant 0.000000e+00 : f32
    %8 = vector.broadcast %cst_3 : f32 to vector<32x1xf32>
    %9 = arith.select %7, %8, %4 : vector<32x1xi1>, vector<32x1xf32>
    %10 = vector.broadcast %9 : vector<32x1xf32> to vector<32x32xf32>
    %11 = arith.mulf %10, %1 : vector<32x32xf32>
    %c0_4 = arith.constant 0 : index
    %c0_5 = arith.constant 0 : index
    %c0_6 = arith.constant 0 : index
    %12 = vector.load %arg2[%c0_4, %c0_5, %c0_6] : memref<1x32x32xf32, #tpu.memory_space<vmem>>, vector<1x32x32xf32>
    %13 = vector.shape_cast %12 : vector<1x32x32xf32> to vector<32x32xf32>
    %14 = vector.shape_cast %11 : vector<32x32xf32> to vector<1x32x32xf32>
    tpu.vector_store %arg2[%c0_4, %c0_5, %c0_6], %14 {strides = array<i32>} : memref<1x32x32xf32, #tpu.memory_space<vmem>>, vector<1x32x32xf32>,
    return
  }
  func.func @transform_0(%arg0: i32) -> (i32, i32, i32) {
    %c0_i32 = arith.constant 0 : i32
    %c0_i32_0 = arith.constant 0 : i32
    %c0_i32_1 = arith.constant 0 : i32
    return %arg0, %c0_i32, %c0_i32_0 : i32, i32, i32
  }
  func.func @transform_1(%arg0: i32) -> (i32, i32, i32) {
    %c0_i32 = arith.constant 0 : i32
    %c0_i32_0 = arith.constant 0 : i32
    %c0_i32_1 = arith.constant 0 : i32
    return %arg0, %c0_i32, %c0_i32_0 : i32, i32, i32
  }
}

</mosaic_0001>

<bundles_post_ra>
// kernel: tpu_custom_call.1
= control target key start
LH: loop header
LB: loop body
LE: loop exit
PB: predicated region body
PF: predicated region fallthrough
CT: control target
= control target key end

     0   :  { %6 = vsyncpa [#allocation3], 0  ;;  %s655_s0 = inlined_call_operand.hbm [shape: f32[4,32,32], index: 0, kind: input, shape index: {}]   ;;  %s656_s1 = inlined_call_operand.hbm [shape: f32[4,32,32], index: 1, kind: output, shape index: {}]  }
   0x1   :  { %8 = vsyncpa [#allocation3 + $0x1], 0 }
   0x2   :  { %9 = vsyncpa [#allocation4], 0 }
   0x3   :  { %11 = vsyncpa [#allocation4 + $0x1], 0  ;;  %s475_s6 = smov 0   ;;  %s477_s7 = smov 0  }
   0x4   :  { %s479_s8 = smov 0   ;;  %s481_s9 = smov 0  }
   0x5 LB: > { %s496_s10 = sadd.s32 4294967295, %s457_s9   ;;  %s287_s11 = sadd.s32 4294967294, %s457_s9   ;;  %s457_s9 = sphi %s481_s9, %s668_s9   ;;  %s453_s8 = sphi %s479_s8, %s667_s8   ;;  %s449_s7 = sphi %s477_s7, %s666_s7   ;;  %s445_s6 = sphi %s475_s6, %s665_s6  }
   0x6   : > { %s500_s12 = sadd.s32 1, %s457_s9   ;;  %s24_s13 = sadd.s32 1, %s453_s8 }
   0x7   : > { %s21_s14 = ssub.s32 %s457_s9, %s500_s12  ;;  %p31_p0 = scmp.ne.s32.totalorder %s453_s8, %s449_s7 }
   0x8   : > { %p22_p1 = scmp.eq.s32.totalorder %s21_s14, 0  ;;  %p32_p2 = scmp.eq.s32.totalorder %s457_s9, 0 }
   0x9   : > { %p37_p3 = scmp.ne.s32.totalorder %s449_s7, %s445_s6  ;;  %p38_p4 = scmp.eq.s32.totalorder %s496_s10, 0 }
   0xa   : > { %s512_s15 = scalar_select %p22_p1, %s453_s8, %s24_s13  }
   0xb   : > { %p514_p5 = por %p32_p2, %p31_p0  ;;  %p518_p6 = por %p38_p4, %p37_p3 }
   0xc   : > { %p61_p7 = scmp.eq.s32.totalorder %s496_s10, 3  ;;  %p67_p8 = scmp.eq.s32.totalorder %s287_s11, 3 }
   0xd   : > { %p315_p9 = scmp.lt.s32.totalorder %s457_s9, 4  ;;  %s87_s20 = sand.u32 1, %s453_s8  }
   0xe   : > { %p524_p10 = por %p61_p7, %p31_p0  ;;  %p528_p11 = por %p67_p8, %p37_p3 }
   0xf   : > { %s301_s21 = sshll.u32 %s457_s9, 9  ;;  %s290_s22 = sshll.u32 %s87_s20, 5 }
  0x10   : > { %s660_s18 = scalar_select %p524_p10, 1, 0 }
  0x11   : > { %s661_s19 = scalar_select %p528_p11, 1, 0 }
  0x12   : > { %s537_s25 = scalar_lea.hbm %s655_s0, %s301_s21  ;;  %s91_s26 = scalar_lea.vmem [#allocation2], %s290_s22 }
  0x13   : > { %s98_s27 = sshll.u32 %s91_s26, 4  ;;  %p541_p12 = pnand %p315_p9, %p514_p5  ;;  %s545_s27 = int_to_ptr.vmem [resolvable:$true] %s98_s27 }
  0x14   : > { %s547_s29 = scalar_lea.sflag [#allocation3], %s87_s20  ;;  %s361_s30 = scalar_lea.hbm %s537_s25, 512 }
  0x15   : > { %p362_p13 = scmp.ne.s32.totalorder %s537_s25, %s361_s30  ;;  %p363_p0 = pneg %p541_p12 }
  0x16   : > { %s366_s4 = scalar_lea.hbm %s655_s0, 2048  ;;  %p367_p3 = scmp.lt.u32.totalorder %s537_s25, %s655_s0 }
  0x17   : > { %p364_p1 = pnand %p363_p0, %p362_p13  ;;  %p368_p4 = scmp.lt.u32.totalorder %s366_s4, %s361_s30 }
  0x18   : > { %p370_p7 = scmp.lt.u32.totalorder %s361_s30, %s537_s25 }
  0x19   : > { %p365_p2 = pneg %p364_p1  ;;  %p369_p5 = por %p368_p4, %p367_p3 }
  0x1b   : > { %p371_p8 = por %p370_p7, %p369_p5 }
  0x1d   : > { %p372_p9 = pnand %p371_p8, %p365_p2 }
  0x1f   : > { %375 = shalt.err (!%p372_p9)
}
  0x20   : > { %s376_s13 = scalar_lea.vmem %s545_s27, 512  ;;  %s459_s14 = smov [#allocation2]  }
  0x21   : > { %p377_p13 = scmp.ne.s32.totalorder %s545_s27, %s376_s13  ;;  %s381_s16 = sshll.u32 %s459_s14, 4  ;;  %s382_s16 = int_to_ptr.vmem [resolvable:$false] %s381_s16 }
  0x22   : > { %s383_s20 = scalar_lea.vmem %s382_s16, 1024  ;;  %p384_p10 = scmp.lt.s32.totalorder %s545_s27, %s382_s16 }
  0x23   : > { %p379_p1 = pnand %p377_p13, %p363_p0  ;;  %p385_p3 = scmp.lt.s32.totalorder %s383_s20, %s376_s13 }
  0x25   : > { %p380_p11 = pneg %p379_p1  ;;  %p386_p4 = por %p385_p3, %p384_p10 }
  0x27   : > { %p387_p5 = pnand %p386_p4, %p380_p11 }
  0x29   : > { %390 = shalt.err (!%p387_p5)
}
  0x2a   : > { %s460_s21 = smov 128   ;;  %s461_s22 = smov 8  }
  0x2b   : > { %310 = dma.hbm_to_vmem [thread:$0]  (!%p541_p12), %s537_s25, 512, %s545_s27, %s547_s29, %s460_s21, %s460_s21, %s461_s22  }
  0x2c   : > { %p293_p0 = scmp.ge.s32.totalorder %s457_s9, 1  ;;  %p106_p2 = scmp.lt.s32.totalorder %s457_s9, 5 }
  0x2e   : > { %p107_p7 = pnand %p293_p0, %p106_p2 }
  0x2f   : > { %s578_s23 = sand.u32 (!%p107_p7), 1, %s449_s7  }
  0x30   : > { %110 = sbr.rel (%p107_p7) target bundleno = 241 (0xf1), region = 24  ;;  %s294_s24 = sshll.u32 (!%p107_p7), %s578_s23, 5 }
  0x31   : > { %s113_s26 = scalar_lea.sflag (!%p107_p7), [#allocation3], %s578_s23  ;;  %s116_s30 = scalar_lea.vmem (!%p107_p7), [#allocation2], %s294_s24 }
  0x37   : > { %436 = dma.done.wait (%p518_p6), %s113_s26, 512  }
  0x38   : > { %438 = vsyncadd (%p518_p6), %s113_s26, 4294966784  ;;  %vm139_vm0 = vcmask 261120   ;;  %v137_v0 = vld [vmem:[%s116_s30 + $0x10] sm:$0xff]  ;;  %v135_v1 = vld [vmem:[%s116_s30] sm:$0xff]  ;;  %s302_s17 = sshll.u32 %s496_s10, 9  ;;  %s134_s25 = scalar_lea.vmem [#allocation5], %s294_s24 }
  0x39   : > { %v588_v2 = vld [vmem:[%s116_s30 + $0x18] sm:$0xff]  ;;  %v146_v3 = vsel %vm139_vm0, %v137_v0, 0.0  ;;  %v140_v4 = vsel %vm139_vm0, %v135_v1, 0.0  ;;  %v592_v5 = vld [vmem:[%s116_s30 + $0x8] sm:$0xff]  ;;  %s214_s27 = sshll.u32 %s134_s25, 4  ;;  %s607_s2 = scalar_lea.hbm %s656_s1, %s302_s17  ;;  %s609_s27 = int_to_ptr.vmem [resolvable:$true] %s214_s27 }
  0x3a   : > { %147 = vadd.xlane.f32.xlu1 %v146_v3  ;;  %141 = vadd.xlane.f32.xlu0 %v140_v4  ;;  %v149_v6 = vsel %vm139_vm0, %v588_v2, 0.0  ;;  %v143_v7 = vsel %vm139_vm0, %v592_v5, 0.0  ;;  %s201_s10 = scalar_lea.sflag [#allocation4], %s578_s23  ;;  %s391_s3 = scalar_lea.vmem %s609_s27, 512 }
  0x3b   : > { %p392_p6 = scmp.ne.s32.totalorder %s609_s27, %s391_s3  ;;  %p663_p10 = scmp.ne.s32.totalorder %s660_s18, 0 }
  0x3c   : > { %s462_s4 = smov [#allocation5]  }
  0x3d   : > { %p393_p11 = pnand %p392_p6, %p663_p10  ;;  %s395_s5 = sshll.u32 %s462_s4, 4  ;;  %s396_s5 = int_to_ptr.vmem [resolvable:$false] %s395_s5 }
  0x3e   : > { %150 = vadd.xlane.f32.xlu1 %v149_v6  ;;  %144 = vadd.xlane.f32.xlu0 %v143_v7  ;;  %s397_s11 = scalar_lea.vmem %s396_s5, 1024  ;;  %p398_p8 = scmp.lt.s32.totalorder %s609_s27, %s396_s5 }
  0x3f   : > { %p394_p12 = pneg %p393_p11  ;;  %p399_p9 = scmp.lt.s32.totalorder %s397_s11, %s391_s3 }
  0x41   : > { %p400_p13 = por %p399_p9, %p398_p8 }
  0x43   : > { %p401_p1 = pnand %p400_p13, %p394_p12 }
  0xc7   : > { %v148_v8 = vpop.xlane.xlu1 %147  ;;  %v142_v9 = vpop.xlane.xlu0 %141 }
  0xc8   : > { %353 = vrsqrt.f32 %v148_v8  ;;  %vm168_vm1 = vcmp.eq.f32.partialorder %v148_v8, inf  ;;  %v171_v15 = vand.u32 2147483648, %v148_v8  ;;  %vm170_vm2 = vcmp.eq.f32.partialorder %v148_v8, 0.0 }
  0xc9   : > { %355 = vrsqrt.f32 %v142_v9  ;;  %vm154_vm3 = vcmp.eq.f32.partialorder %v142_v9, inf  ;;  %v157_v18 = vand.u32 2147483648, %v142_v9  ;;  %vm156_vm4 = vcmp.eq.f32.partialorder %v142_v9, 0.0 }
  0xcb   : > { %v151_v10 = vpop.xlane.xlu1 %150  ;;  %v145_v11 = vpop.xlane.xlu0 %144 }
  0xcc   : > { %357 = vrsqrt.f32 %v151_v10  ;;  %vm175_vm5 = vcmp.eq.f32.partialorder %v151_v10, inf  ;;  %vm177_vm6 = vcmp.eq.f32.partialorder %v151_v10, 0.0  ;;  %v178_v27 = vand.u32 2147483648, %v151_v10 }
  0xcd   : > { %359 = vrsqrt.f32 %v145_v11  ;;  %vm161_vm7 = vcmp.eq.f32.partialorder %v145_v11, inf  ;;  %vm163_vm9 = vcmp.eq.f32.partialorder %v145_v11, 0.0  ;;  %v164_v30 = vand.u32 2147483648, %v145_v11 }
  0xd2   : > { %v354_v12 = vpop.eup %353 }
  0xd3   : > { %v356_v13 = vpop.eup %355  ;;  %v167_v14 = vmul.f32 %v354_v12, %v148_v8 }
  0xd4   : > { %v153_v16 = vmul.f32 %v356_v13, %v142_v9 }
  0xd5   : > { %v169_v17 = vsel %vm168_vm1, %v148_v8, %v167_v14 }
  0xd6   : > { %v358_v19 = vpop.eup %357  ;;  %v172_v20 = vsel %vm170_vm2, %v171_v15, %v169_v17  ;;  %v155_v21 = vsel %vm154_vm3, %v142_v9, %v153_v16 }
  0xd7   : > { %v360_v22 = vpop.eup %359  ;;  %v182_v23 = vand.u32 2147483647, %v172_v20  ;;  %v158_v24 = vsel %vm156_vm4, %v157_v18, %v155_v21  ;;  %v174_v25 = vmul.f32 %v358_v19, %v151_v10 }
  0xd8   : > { %v180_v26 = vand.u32 2147483647, %v158_v24  ;;  %v160_v28 = vmul.f32 %v360_v22, %v145_v11 }
  0xd9   : > { %vm186_vm8 = vcmp.eq.f32.partialorder %v182_v23, inf  ;;  %v176_v29 = vsel %vm175_vm5, %v151_v10, %v174_v25 }
  0xda   : > { %v190_v31 = vsel %vm186_vm8, 0.0, %v172_v20  ;;  %vm184_vm10 = vcmp.eq.f32.partialorder %v180_v26, inf  ;;  %v179_v32 = vsel %vm177_vm6, %v178_v27, %v176_v29  ;;  %v162_v33 = vsel %vm161_vm7, %v145_v11, %v160_v28 }
  0xdb   : > { %v194_v34 = vmul.f32 %v190_v31, %v137_v0  ;;  %v188_v35 = vsel %vm184_vm10, 0.0, %v158_v24  ;;  %v183_v36 = vand.u32 2147483647, %v179_v32  ;;  %v165_v37 = vsel %vm163_vm9, %v164_v30, %v162_v33 }
  0xdc   : > { %v192_v38 = vmul.f32 %v188_v35, %v135_v1  ;;  %v181_v39 = vand.u32 2147483647, %v165_v37 }
  0xdd   : > { %198 = vst.msk [vmem:[%s134_s25 + $0x10] sm:$0xff] %vm139_vm0, %v194_v34  ;;  %vm187_vm11 = vcmp.eq.f32.partialorder %v183_v36, inf }
  0xde   : > { %196 = vst.msk [vmem:[%s134_s25] sm:$0xff] %vm139_vm0, %v192_v38  ;;  %v191_v40 = vsel %vm187_vm11, 0.0, %v179_v32  ;;  %vm185_vm12 = vcmp.eq.f32.partialorder %v181_v39, inf }
  0xdf   : > { %v195_v41 = vmul.f32 %v191_v40, %v588_v2  ;;  %v189_v42 = vsel %vm185_vm12, 0.0, %v165_v37 }
  0xe0   : > { %v193_v43 = vmul.f32 %v189_v42, %v592_v5 }
  0xe1   : > { %199 = vst.msk [vmem:[%s134_s25 + $0x18] sm:$0xff] %vm139_vm0, %v195_v41 }
  0xe2   : > { %197 = vst.msk [vmem:[%s134_s25 + $0x8] sm:$0xff] %vm139_vm0, %v193_v43 }
  0xe3   : > { %404 = shalt.err (!%p401_p1)
}
  0xe4   : > { %s405_s13 = scalar_lea.hbm %s607_s2, 512  ;;  %s409_s20 = scalar_lea.hbm %s656_s1, 2048 }
  0xe5   : > { %p406_p3 = scmp.ne.s32.totalorder %s607_s2, %s405_s13  ;;  %p410_p0 = scmp.lt.u32.totalorder %s607_s2, %s656_s1 }
  0xe6   : > { %p411_p2 = scmp.lt.u32.totalorder %s409_s20, %s405_s13  ;;  %p413_p6 = scmp.lt.u32.totalorder %s405_s13, %s607_s2 }
  0xe7   : > { %p407_p4 = pnand %p406_p3, %p663_p10 }
  0xe8   : > { %p412_p7 = por %p411_p2, %p410_p0 }
  0xe9   : > { %p408_p5 = pneg %p407_p4 }
  0xea   : > { %p414_p11 = por %p413_p6, %p412_p7 }
  0xec   : > { %p415_p12 = pnand %p414_p11, %p408_p5 }
  0xee   : > { %418 = shalt.err (!%p415_p12)
}
  0xef   : > { %s463_s24 = smov 128   ;;  %s464_s26 = smov 8  }
  0xf0   : > { %305 = dma.vmem_to_hbm [thread:$0]  (%p663_p10), %s609_s27, 512, %s607_s2, %s201_s10, %s463_s24, %s463_s24, %s464_s26  }
  0xf1 PF: > { %p316_p8 = scmp.ge.s32.totalorder %s457_s9, 2  ;;  %s229_s30 = sand.u32 1, %s445_s6  }
  0xf2   : > { %p664_p9 = scmp.ne.s32.totalorder %s661_s19, 0  ;;  %s230_s17 = scalar_lea.sflag [#allocation4], %s229_s30 }
  0xf4   : > { %p312_p13 = pnand %p316_p8, %p664_p9 }
  0xf6   : > { %440 = dma.done.wait (!%p312_p13), %s230_s17, 512  }
  0xf7   : > { %442 = vsyncadd (!%p312_p13), %s230_s17, 4294966784  ;;  %p14_p1 = scmp.ge.s32.totalorder %s500_s12, 6   ;;  %s665_s6 = smov %s449_s7 }
  0xf8   : > { %s666_s7 = smov %s453_s8  ;;  %s667_s8 = smov %s512_s15 }
  0xf9   : > { %s668_s9 = smov %s500_s12  ;;  %16 = sbr.rel (!%p14_p1) target bundleno = 5 (0x5), region = 69 }
 0x100   :  { %235 = vsyncpa [#allocation3], 1 }
 0x101   :  { %237 = vsyncpa [#allocation3 + $0x1], 1 }
 0x102   :  { %238 = vsyncpa [#allocation4], 1 }
 0x103   :  { %240 = vsyncpa [#allocation4 + $0x1], 1 }

</bundles_post_ra>
